<compile_context>
chip_gen: v7x
topology: tpu7x:2x2x1
jax: 0.10.0
libtpu: 0.0.40
codegen_flags: <defaults>
</compile_context>

<pallas_src>
import functools

import jax
import jax.numpy as jnp
from jax.experimental import pallas as pl
from jax.experimental.pallas import tpu as pltpu


def _round_up(x, m):
    return ((x + m - 1) // m) * m


def _layernorm_kernel(x_ref, gamma_ref, beta_ref, o_ref, *,
                      m_real, eps, n_real, tile_rows, ragged):
    # x_ref:     (TR, M) row tile (each row is an independent sample)
    # gamma_ref: (1,  M) resident across the grid
    # beta_ref:  (1,  M) resident across the grid
    x = x_ref[...].astype(jnp.float32)

    if ragged:
        # Last row block is partial: zero the out-of-range rows so the tail
        # computation stays finite (its outputs are dropped by masked stores).
        row0 = pl.program_id(0) * tile_rows
        rows = row0 + jax.lax.broadcasted_iota(jnp.int32, (x.shape[0], 1), 0)
        x = jnp.where(rows < n_real, x, 0.0)

    # Single pass over the tile: sums over exactly the real M columns.
    s = jnp.sum(x, axis=1, keepdims=True)                        # (TR, 1)
    ss = jnp.sum(x * x, axis=1, keepdims=True)                   # (TR, 1)
    mean = s * (1.0 / m_real)                                    # (TR, 1)
    # Unbiased variance (Bessel correction, M-1) to match torch.Tensor.std.
    var = (ss - s * mean) / (m_real - 1.0)
    var = jnp.maximum(var, 0.0)          # guard tiny negatives from cancellation
    std = jnp.sqrt(var)                                          # (TR, 1)

    # Exact reciprocal on (TR, 1) values only — negligible cost either way.
    inv = pl.reciprocal(std + eps, approx=False)                 # (TR, 1)

    y = (x - mean) * inv                                         # (TR, M)
    y = y * gamma_ref[...] + beta_ref[...]
    o_ref[...] = y.astype(o_ref.dtype)


def _choose_row_tile(N, M, itemsize, block_rows):
    # VMEM budget per grid step: double-buffered (input + output) tiles in the
    # native dtype plus ~3 f32-sized compiler temporaries for the kernel body.
    # Keep total under ~40 MiB so we stay below the 48 MiB scoped limit even
    # on v7x (64 MiB physical VMEM); v5e/v6e (128 MiB) have plenty of slack.
    budget = 40 * 1024 * 1024
    per_row = M * (4 * itemsize + 3 * 4)
    tr = max(8, budget // per_row)
    tr = min(tr, block_rows, _round_up(N, 8))
    tr = max(8, (tr // 8) * 8)

    # v7x megacore: the single "parallel" row axis is sharded across 2 TCs;
    # make sure there are at least ~4 grid steps when N allows it.
    if N > 8 and pl.cdiv(N, tr) < 4:
        tr_alt = max(8, _round_up(pl.cdiv(N, 4), 8))
        tr = min(tr, tr_alt)
    return tr


@functools.partial(jax.jit, static_argnames=("eps", "block_rows"))
def layer_norm(x, gamma, beta, eps=1e-5, block_rows=512):
    """x: (N, C, H, W); gamma, beta: (C,). Returns (N, C, H, W)."""
    N, C, H, W = x.shape
    M = C * H * W
    assert M > 1, "LayerNorm needs at least 2 features (unbiased std)"

    TR = _choose_row_tile(N, M, x.dtype.itemsize, block_rows)
    n_blocks = pl.cdiv(N, TR)
    ragged = (N % TR) != 0

    # No HBM padding: full-width feature block, ragged last row block.
    x2d = x.reshape(N, M)

    # Per-channel affine expanded to one resident (1, M) f32 row each; under
    # jit XLA fuses / constant-folds this for fixed parameters.
    gamma_row = jnp.repeat(gamma.astype(jnp.float32), H * W).reshape(1, M)
    beta_row = jnp.repeat(beta.astype(jnp.float32), H * W).reshape(1, M)

    kernel = functools.partial(
        _layernorm_kernel,
        m_real=float(M), eps=float(eps),
        n_real=N, tile_rows=TR, ragged=ragged,
    )

    out2d = pl.pallas_call(
        kernel,
        out_shape=jax.ShapeDtypeStruct((N, M), x.dtype),
        grid=(n_blocks,),
        in_specs=[
            pl.BlockSpec((TR, M), lambda i: (i, 0)),   # x row tile
            pl.BlockSpec((1, M), lambda i: (0, 0)),    # gamma (resident)
            pl.BlockSpec((1, M), lambda i: (0, 0)),    # beta  (resident)
        ],
        out_specs=pl.BlockSpec((TR, M), lambda i: (i, 0)),
        compiler_params=pltpu.CompilerParams(
            dimension_semantics=("parallel",),
            vmem_limit_bytes=48 * 1024 * 1024,
        ),
    )(x2d, gamma_row, beta_row)

    return out2d.reshape(N, C, H, W)


def _reference(x, gamma, beta, eps=1e-5):
    N = x.shape[0]
    flat = x.reshape(N, -1)
    mean = flat.mean(axis=1).reshape(N, 1, 1, 1)
    std = jnp.sqrt(((flat - flat.mean(axis=1, keepdims=True)) ** 2).sum(axis=1)
                   / (flat.shape[1] - 1)).reshape(N, 1, 1, 1)
    y = (x - mean) / (std + eps)
    return y * gamma.reshape(1, -1, 1, 1) + beta.reshape(1, -1, 1, 1)


if __name__ == "__main__":
    key = jax.random.PRNGKey(0)
    kx, kg = jax.random.split(key)

    N, C, H, W = 2, 4, 16, 16
    x = jax.random.normal(kx, (N, C, H, W), dtype=jnp.float32)
    # deterministic parameter init mirroring nn.Parameter shapes:
    # gamma ~ U[0,1) of shape (C,), beta zeros of shape (C,)
    gamma = jax.random.uniform(kg, (C,), dtype=jnp.float32)
    beta = jnp.zeros((C,), dtype=jnp.float32)

    out = layer_norm(x, gamma, beta, eps=1e-5)
    out = jax.block_until_ready(out)

    ref = _reference(x, gamma, beta, eps=1e-5)
    assert out.shape == (N, C, H, W)
    assert jnp.allclose(out, ref, atol=1e-5, rtol=1e-5), "mismatch vs reference"

    print("KERNEL_OK")
</pallas_src>

<mosaic_0001>
module attributes {stable_mosaic.version = 11 : i64} {
  func.func @_layernorm_kernel(%arg0: i32, %arg1: memref<8x1024xf32, #tpu.memory_space<vmem>>, %arg2: memref<1x1024xf32, #tpu.memory_space<vmem>>, %arg3: memref<1x1024xf32, #tpu.memory_space<vmem>>, %arg4: memref<8x1024xf32, #tpu.memory_space<vmem>>) attributes {dimension_semantics = [#tpu.dimension_semantics<parallel>], iteration_bounds = array<i64: 1>, scalar_prefetch = 0 : i64, scratch_operands = 0 : i64, tpu.core_type = #tpu.core_type<tc>, window_params = [{transform_indices = @transform_0, window_bounds = array<i64: 8, 1024>}, {pipeline_mode = #tpu.pipeline_mode<synchronous>, transform_indices = @transform_1, window_bounds = array<i64: 1, 1024>}, {pipeline_mode = #tpu.pipeline_mode<synchronous>, transform_indices = @transform_2, window_bounds = array<i64: 1, 1024>}, {transform_indices = @transform_3, window_bounds = array<i64: 8, 1024>}]} {
    %c0 = arith.constant 0 : index
    %c0_0 = arith.constant 0 : index
    %0 = vector.load %arg1[%c0, %c0_0] : memref<8x1024xf32, #tpu.memory_space<vmem>>, vector<8x1024xf32>
    %c8_i32 = arith.constant 8 : i32
    %1 = arith.muli %arg0, %c8_i32 : i32
    %2 = tpu.iota {dimensions = array<i32: 0>} : vector<8x1xi32>
    %3 = vector.broadcast %1 : i32 to vector<8x1xi32>
    %4 = arith.addi %3, %2 : vector<8x1xi32>
    %c2_i32 = arith.constant 2 : i32
    %5 = vector.broadcast %c2_i32 : i32 to vector<8x1xi32>
    %6 = arith.cmpi slt, %4, %5 : vector<8x1xi32>
    %cst = arith.constant 0.000000e+00 : f32
    %7 = vector.shape_cast %6 : vector<8x1xi1> to vector<8x1xi1>
    %8 = vector.broadcast %7 : vector<8x1xi1> to vector<8x1024xi1>
    %9 = vector.broadcast %cst : f32 to vector<8x1024xf32>
    %10 = arith.select %8, %0, %9 : vector<8x1024xi1>, vector<8x1024xf32>
    %cst_1 = arith.constant dense<0.000000e+00> : vector<8xf32>
    %11 = vector.multi_reduction <add>, %10, %cst_1 [1] : vector<8x1024xf32> to vector<8xf32>
    %12 = vector.shape_cast %11 : vector<8xf32> to vector<8x1xf32>
    %13 = arith.mulf %10, %10 : vector<8x1024xf32>
    %cst_2 = arith.constant dense<0.000000e+00> : vector<8xf32>
    %14 = vector.multi_reduction <add>, %13, %cst_2 [1] : vector<8x1024xf32> to vector<8xf32>
    %15 = vector.shape_cast %14 : vector<8xf32> to vector<8x1xf32>
    %cst_3 = arith.constant 9.765625E-4 : f32
    %16 = vector.broadcast %cst_3 : f32 to vector<8x1xf32>
    %17 = arith.mulf %12, %16 : vector<8x1xf32>
    %18 = arith.mulf %12, %17 : vector<8x1xf32>
    %19 = arith.subf %15, %18 : vector<8x1xf32>
    %cst_4 = arith.constant 1.023000e+03 : f32
    %20 = vector.broadcast %cst_4 : f32 to vector<8x1xf32>
    %21 = arith.divf %19, %20 : vector<8x1xf32>
    %cst_5 = arith.constant 0.000000e+00 : f32
    %22 = vector.broadcast %cst_5 : f32 to vector<8x1xf32>
    %23 = arith.maximumf %21, %22 : vector<8x1xf32>
    %24 = math.sqrt %23 : vector<8x1xf32>
    %cst_6 = arith.constant 9.99999974E-6 : f32
    %25 = vector.broadcast %cst_6 : f32 to vector<8x1xf32>
    %26 = arith.addf %24, %25 : vector<8x1xf32>
    %27 = tpu.reciprocal %26 : vector<8x1xf32> -> vector<8x1xf32>
    %28 = vector.broadcast %17 : vector<8x1xf32> to vector<8x1024xf32>
    %29 = arith.subf %10, %28 : vector<8x1024xf32>
    %30 = vector.broadcast %27 : vector<8x1xf32> to vector<8x1024xf32>
    %31 = arith.mulf %29, %30 : vector<8x1024xf32>
    %c0_7 = arith.constant 0 : index
    %c0_8 = arith.constant 0 : index
    %32 = vector.load %arg2[%c0_7, %c0_8] : memref<1x1024xf32, #tpu.memory_space<vmem>>, vector<1x1024xf32>
    %33 = vector.broadcast %32 : vector<1x1024xf32> to vector<8x1024xf32>
    %34 = arith.mulf %31, %33 : vector<8x1024xf32>
    %c0_9 = arith.constant 0 : index
    %c0_10 = arith.constant 0 : index
    %35 = vector.load %arg3[%c0_9, %c0_10] : memref<1x1024xf32, #tpu.memory_space<vmem>>, vector<1x1024xf32>
    %36 = vector.broadcast %35 : vector<1x1024xf32> to vector<8x1024xf32>
    %37 = arith.addf %34, %36 : vector<8x1024xf32>
    %c0_11 = arith.constant 0 : index
    %c0_12 = arith.constant 0 : index
    %38 = vector.load %arg4[%c0_11, %c0_12] : memref<8x1024xf32, #tpu.memory_space<vmem>>, vector<8x1024xf32>
    tpu.vector_store %arg4[%c0_11, %c0_12], %37 {strides = array<i32>} : memref<8x1024xf32, #tpu.memory_space<vmem>>, vector<8x1024xf32>,
    return
  }
  func.func @transform_0(%arg0: i32) -> (i32, i32) {
    %c0_i32 = arith.constant 0 : i32
    %c0_i32_0 = arith.constant 0 : i32
    return %arg0, %c0_i32 : i32, i32
  }
  func.func @transform_1(%arg0: i32) -> (i32, i32) {
    %c0_i32 = arith.constant 0 : i32
    %c0_i32_0 = arith.constant 0 : i32
    %c0_i32_1 = arith.constant 0 : i32
    return %c0_i32, %c0_i32_0 : i32, i32
  }
  func.func @transform_2(%arg0: i32) -> (i32, i32) {
    %c0_i32 = arith.constant 0 : i32
    %c0_i32_0 = arith.constant 0 : i32
    %c0_i32_1 = arith.constant 0 : i32
    return %c0_i32, %c0_i32_0 : i32, i32
  }
  func.func @transform_3(%arg0: i32) -> (i32, i32) {
    %c0_i32 = arith.constant 0 : i32
    %c0_i32_0 = arith.constant 0 : i32
    return %arg0, %c0_i32 : i32, i32
  }
}

</mosaic_0001>

<bundles_post_ra>
// kernel: layer_norm.1
= control target key start
LH: loop header
LB: loop body
LE: loop exit
PB: predicated region body
PF: predicated region fallthrough
CT: control target
= control target key end

     0   :  { %v23_v0 = vlaneseq  ;;  %v423_v1 = vmov 1983009808   ;;  %s570_s0 = inlined_call_operand.vmem [shape: f32[2,1024], index: 0, kind: input, shape index: {}]   ;;  %s571_s1 = inlined_call_operand.vmem [shape: f32[1,1024], index: 1, kind: input, shape index: {}]   ;;  %s572_s2 = inlined_call_operand.vmem [shape: f32[1,1024], index: 2, kind: input, shape index: {}]   ;;  %s573_s3 = inlined_call_operand.vmem [shape: f32[2,1024], index: 3, kind: output, shape index: {}]  }
   0x1   :  { %v43_v2 = vunpack.c.l.s4 %v423_v1  ;;  %v407_v4 = vld [vmem:[%s570_s0] ss:$16 sps:$4 sm:$0xff]   ;;  %v409_v5 = vld [vmem:[%s570_s0 + $0x4] ss:$16 sps:$4 sm:$0xff]   ;;  %v413_v9 = vld [vmem:[%s570_s0 + $0x8] ss:$16 sps:$4 sm:$0xff]  }
   0x2   :  { %v444_v3 = vshrl.u32 %v23_v0, 7  ;;  %v410_v6 = vld [vmem:[%s570_s0 + $0x20] ss:$16 sps:$4 sm:$0xff]   ;;  %v412_v7 = vld [vmem:[%s570_s0 + $0x24] ss:$16 sps:$4 sm:$0xff]  }
   0x3   :  { %v44_v8 = vunpack.c.0.s8 %v43_v2  ;;  %v416_v11 = vld [vmem:[%s570_s0 + $0x28] ss:$16 sps:$4 sm:$0xff]   ;;  %v415_v16 = vld [vmem:[%s570_s0 + $0xc] ss:$16 sps:$4 sm:$0xff]  }
   0x4   :  { %vm27_vm0 = vcmp.lt.s32.totalorder %v444_v3, 2  ;;  %v418_v17 = vld [vmem:[%s570_s0 + $0x2c] ss:$16 sps:$4 sm:$0xff]  }
   0x5   :  { %v462_v10 = vsub.s32 %v44_v8, %v444_v3 }
   0x7   :  { %v48_v12 = vrot.slane %v407_v4, %v462_v10  ;;  %v55_v13 = vrot.slane %v409_v5, %v462_v10  ;;  %v62_v14 = vrot.slane %v410_v6, %v462_v10  ;;  %v69_v15 = vrot.slane %v412_v7, %v462_v10 }
   0x8   :  { %v84_v18 = vrot.slane %v413_v9, %v462_v10  ;;  %v98_v19 = vrot.slane %v416_v11, %v462_v10  ;;  %v91_v26 = vrot.slane %v415_v16, %v462_v10  ;;  %v105_v27 = vrot.slane %v418_v17, %v462_v10 }
   0x9   :  { %v70_v20 = vcombine.low %v48_v12, %v62_v14  ;;  %v71_v21 = vcombine.high %v48_v12, %v62_v14  ;;  %v72_v22 = vcombine.low %v55_v13, %v69_v15  ;;  %v73_v23 = vcombine.high %v55_v13, %v69_v15  ;;  %v183_v15 = vld [vmem:[%s571_s1] sm:$0xff] }
   0xa   :  { %v106_v28 = vcombine.low %v84_v18, %v98_v19  ;;  %v107_v31 = vcombine.high %v84_v18, %v98_v19  ;;  %v108_v34 = vcombine.low %v91_v26, %v105_v27  ;;  %v109_v36 = vcombine.high %v91_v26, %v105_v27  ;;  %v233_v19 = vld [vmem:[%s572_s2] sm:$0xff] }
   0xb   :  { %v482_v24 = vsel %vm27_vm0, %v70_v20, 0.0  ;;  %v486_v25 = vsel %vm27_vm0, %v71_v21, 0.0  ;;  %v492_v29 = vsel %vm27_vm0, %v72_v22, 0.0  ;;  %v498_v32 = vsel %vm27_vm0, %v73_v23, 0.0 }
   0xc   :  { %v126_v30 = vadd.f32 %v486_v25, %v482_v24  ;;  %v503_v35 = vsel %vm27_vm0, %v106_v28, 0.0  ;;  %v508_v38 = vsel %vm27_vm0, %v107_v31, 0.0  ;;  %v135_v39 = vmul.f32 %v482_v24, %v482_v24 }
   0xd   :  { %v136_v40 = vmul.f32 %v486_v25, %v486_v25  ;;  %v137_v41 = vmul.f32 %v492_v29, %v492_v29  ;;  %v519_v43 = vsel %vm27_vm0, %v108_v34, 0.0  ;;  %v138_v44 = vmul.f32 %v498_v32, %v498_v32 }
   0xe   :  { %v127_v33 = vadd.f32 %v126_v30, %v492_v29  ;;  %v526_v47 = vsel %vm27_vm0, %v109_v36, 0.0  ;;  %v139_v48 = vmul.f32 %v503_v35, %v503_v35  ;;  %v140_v51 = vmul.f32 %v508_v38, %v508_v38 }
   0xf   :  { %v143_v45 = vadd.f32 %v136_v40, %v135_v39  ;;  %v141_v54 = vmul.f32 %v519_v43, %v519_v43  ;;  %v142_v56 = vmul.f32 %v526_v47, %v526_v47  ;;  %v187_v11 = vsub.s32 0, %v444_v3 }
  0x10   :  { %v128_v37 = vadd.f32 %v127_v33, %v498_v32  ;;  %v191_v12 = vsub.s32 1, %v444_v3  ;;  %v195_v13 = vsub.s32 2, %v444_v3  ;;  %v199_v14 = vsub.s32 3, %v444_v3 }
  0x11   :  { %v144_v49 = vadd.f32 %v143_v45, %v137_v41  ;;  %v203_v16 = vsub.s32 4, %v444_v3  ;;  %v207_v17 = vsub.s32 5, %v444_v3  ;;  %v211_v18 = vsub.s32 6, %v444_v3 }
  0x12   :  { %v129_v42 = vadd.f32 %v128_v37, %v503_v35  ;;  %v215_v20 = vsub.s32 7, %v444_v3  ;;  %v188_v21 = vrot.slane %v183_v15, %v187_v11  ;;  %v192_v22 = vrot.slane %v183_v15, %v191_v12 }
  0x13   :  { %v145_v52 = vadd.f32 %v144_v49, %v138_v44  ;;  %v196_v23 = vrot.slane %v183_v15, %v195_v13  ;;  %v200_v26 = vrot.slane %v183_v15, %v199_v14  ;;  %v204_v27 = vrot.slane %v183_v15, %v203_v16 }
  0x14   :  { %v130_v46 = vadd.f32 %v129_v42, %v508_v38  ;;  %v208_v28 = vrot.slane %v183_v15, %v207_v17  ;;  %v238_v30 = vrot.slane %v233_v19, %v187_v11  ;;  %v242_v31 = vrot.slane %v233_v19, %v191_v12 }
  0x15   :  { %v146_v55 = vadd.f32 %v145_v52, %v139_v48  ;;  %v212_v33 = vrot.slane %v183_v15, %v211_v18  ;;  %v246_v34 = vrot.slane %v233_v19, %v195_v13  ;;  %v250_v36 = vrot.slane %v233_v19, %v199_v14 }
  0x16   :  { %v131_v50 = vadd.f32 %v130_v46, %v519_v43  ;;  %v254_v37 = vrot.slane %v233_v19, %v203_v16  ;;  %v216_v39 = vrot.slane %v183_v15, %v215_v20  ;;  %v258_v40 = vrot.slane %v233_v19, %v207_v17 }
  0x17   :  { %v147_v57 = vadd.f32 %v146_v55, %v140_v51  ;;  %v262_v41 = vrot.slane %v233_v19, %v211_v18  ;;  %v266_v42 = vrot.slane %v233_v19, %v215_v20 }
  0x18   :  { %v132_v53 = vadd.f32 %v131_v50, %v526_v47 }
  0x19   :  { %v148_v58 = vadd.f32 %v147_v57, %v141_v54 }
  0x1a   :  { %133 = vadd.xlane.f32.xlu0 %v132_v53 }
  0x1b   :  { %v149_v59 = vadd.f32 %v148_v58, %v142_v56 }
  0x1e   :  { %150 = vadd.xlane.f32.xlu0 %v149_v59 }
  0xa7   :  { %v134_v60 = vpop.xlane.xlu0 %133 }
  0xa8   :  { %v152_v61 = vmul.f32 0.0009765625, %v134_v60 }
  0xaa   :  { %v153_v62 = vmul.f32 %v152_v61, %v134_v60  ;;  %v167_v44 = vsub.f32 %v482_v24, %v152_v61  ;;  %v168_v3 = vsub.f32 %v486_v25, %v152_v61  ;;  %v169_v45 = vsub.f32 %v492_v29, %v152_v61 }
  0xab   :  { %v151_v63 = vpop.xlane.xlu0 %150  ;;  %v170_v46 = vsub.f32 %v498_v32, %v152_v61  ;;  %v171_v49 = vsub.f32 %v503_v35, %v152_v61  ;;  %v172_v50 = vsub.f32 %v508_v38, %v152_v61  ;;  %v173_v51 = vsub.f32 %v519_v43, %v152_v61 }
  0xac   :  { %v154_v0 = vsub.f32 %v151_v63, %v153_v62  ;;  %v174_v52 = vsub.f32 %v526_v47, %v152_v61 }
  0xae   :  { %v156_v1 = vmul.f32 0.0009775171, %v154_v0 }
  0xb0   :  { %v157_v2 = vmax.f32 %v156_v1, 0.0 }
  0xb2   :  { %419 = vrsqrt.f32 %v157_v2  ;;  %vm160_vm1 = vcmp.eq.f32.partialorder %v157_v2, inf  ;;  %v163_v6 = vand.u32 2147483648, %v157_v2  ;;  %vm162_vm2 = vcmp.eq.f32.partialorder %v157_v2, 0.0 }
  0xbc   :  { %v420_v4 = vpop.eup %419 }
  0xbd   :  { %v159_v5 = vmul.f32 %v420_v4, %v157_v2 }
  0xbf   :  { %v161_v7 = vsel %vm160_vm1, %v157_v2, %v159_v5 }
  0xc0   :  { %v164_v8 = vsel %vm162_vm2, %v163_v6, %v161_v7 }
  0xc1   :  { %v165_v9 = vadd.f32 1e-05, %v164_v8 }
  0xc3   :  { %421 = vrcp.f32 %v165_v9 }
  0xcd   :  { %v422_v48 = vpop.eup %421 }
  0xce   :  { %v175_v53 = vmul.f32 %v422_v48, %v167_v44  ;;  %v176_v54 = vmul.f32 %v422_v48, %v168_v3  ;;  %v177_v55 = vmul.f32 %v422_v48, %v169_v45  ;;  %v178_v56 = vmul.f32 %v422_v48, %v170_v46 }
  0xcf   :  { %v179_v24 = vmul.f32 %v422_v48, %v171_v49  ;;  %v180_v57 = vmul.f32 %v422_v48, %v172_v50  ;;  %v181_v25 = vmul.f32 %v422_v48, %v173_v51  ;;  %v182_v58 = vmul.f32 %v422_v48, %v174_v52 }
  0xd0   :  { %v225_v29 = vmul.f32 %v188_v21, %v175_v53  ;;  %v226_v59 = vmul.f32 %v192_v22, %v176_v54  ;;  %v227_v32 = vmul.f32 %v196_v23, %v177_v55  ;;  %v228_v60 = vmul.f32 %v200_v26, %v178_v56 }
  0xd1   :  { %v229_v62 = vmul.f32 %v204_v27, %v179_v24  ;;  %v230_v35 = vmul.f32 %v208_v28, %v180_v57  ;;  %v231_v63 = vmul.f32 %v212_v33, %v181_v25  ;;  %v232_v38 = vmul.f32 %v216_v39, %v182_v58 }
  0xd2   :  { %v275_v0 = vadd.f32 %v238_v30, %v225_v29  ;;  %v276_v43 = vadd.f32 %v242_v31, %v226_v59  ;;  %v277_v1 = vadd.f32 %v246_v34, %v227_v32  ;;  %v278_v47 = vadd.f32 %v250_v36, %v228_v60 }
  0xd3   :  { %v279_v61 = vadd.f32 %v254_v37, %v229_v62  ;;  %v280_v2 = vadd.f32 %v258_v40, %v230_v35  ;;  %v281_v4 = vadd.f32 %v262_v41, %v231_v63  ;;  %v282_v5 = vadd.f32 %v266_v42, %v232_v38 }
  0xd4   :  { %v291_v6 = vcombine.low %v275_v0, %v276_v43  ;;  %v293_v7 = vcombine.low %v277_v1, %v278_v47 }
  0xd5   :  { %v327_v8 = vcombine.low %v279_v61, %v280_v2  ;;  %v329_v9 = vcombine.low %v281_v4, %v282_v5 }
  0xd6   :  { %v301_v11 = vrot.slane %v291_v6, %v462_v10  ;;  %v315_v12 = vrot.slane %v293_v7, %v462_v10 }
  0xd7   :  { %v337_v13 = vrot.slane %v327_v8, %v462_v10  ;;  %v351_v14 = vrot.slane %v329_v9, %v462_v10 }
  0xd8   :  { %v323_v15 = vcombine.low %v301_v11, %v315_v12 }
  0xd9   :  { %v359_v16 = vcombine.low %v337_v13, %v351_v14 }
  0xda   :  { %394 = vst [vmem:[%s573_s3] sm:$0xff] %v323_v15 }
  0xdb   :  { %396 = vst [vmem:[%s573_s3 + $0x8] sm:$0xff] %v359_v16 }

</bundles_post_ra>
